<compile_context>
chip_gen: v7x
topology: tpu7x:2x2x1
jax: 0.10.0
libtpu: 0.0.40
codegen_flags: <defaults>
</compile_context>

<pallas_src>
import jax
import jax.numpy as jnp
from jax.experimental import pallas as pl
from jax.experimental.pallas import tpu as pltpu


def instance_attention_kernel(x_ref, w1t_ref, w2_ref, o_ref):
    # x_ref:   (TB, N, C)   TB bags per grid step (native dtype; no blanket f32 upcast)
    # w1t_ref: (C, H)       first linear, pre-transposed in the wrapper
    # w2_ref:  (1, H)       second linear, PyTorch (out, in) layout
    # o_ref:   (TB, C)      pooled bag representations (lane-dense store)
    x = x_ref[...]                                   # (TB, N, C)
    tb, n, c = x.shape
    h_dim = w1t_ref.shape[1]

    w1t = w1t_ref[...].astype(x.dtype)               # (C, H)
    w2 = w2_ref[...].astype(jnp.float32)             # (1, H)

    # ---- Attention scores: one fused pass over x on the MXU, f32 accumulation. ----
    x2 = x.reshape(tb * n, c)                                           # free (merge leading dims)
    h = jnp.dot(x2, w1t, preferred_element_type=jnp.float32)            # (TB*N, H)  MXU
    t = jnp.tanh(h)                                                     # EUP
    t3 = t.reshape(tb, n, h_dim)                                        # free (split leading dim)

    # H-collapse via a tiny batched dot; its MXU output is already (TB, 1, N) with N on the
    # 128-lane axis, so the softmax below runs full lane width.
    w2b = jnp.broadcast_to(w2.reshape(1, 1, h_dim), (tb, 1, h_dim))
    s = jnp.einsum("bqh,bnh->bqn", w2b, t3,
                   preferred_element_type=jnp.float32)                  # (TB, 1, N)

    # ---- Softmax over instances (last axis = lanes). ----
    m = jnp.max(s, axis=-1, keepdims=True)                              # (TB, 1, 1)
    e = jnp.exp(s - m)                                                  # (TB, 1, N) full width
    den = jnp.sum(e, axis=-1, keepdims=True)                            # (TB, 1, 1)
    inv = pl.reciprocal(den, approx=True)                               # EUP approx path
    inv = inv * (2.0 - den * inv)                                       # one Newton step -> ~f32 exact
    att = e * inv                                                       # (TB, 1, N)

    # ---- Attention-weighted pooling: batched dot contracting N on the idle MXU. ----
    pooled = jnp.einsum("bqn,bnc->bqc", att.astype(x.dtype), x,
                        preferred_element_type=jnp.float32)             # (TB, 1, C)
    o_ref[...] = pooled.reshape(tb, c).astype(o_ref.dtype)              # lane-dense (TB, C) store


def _round_up(v, m):
    return ((v + m - 1) // m) * m


def _vmem_budgets():
    """(padded, double-buffered block budget, vmem_limit_bytes), generation-aware."""
    vmem_bytes = None
    try:
        vmem_bytes = int(pltpu.get_tpu_info().vmem_capacity_bytes)
    except Exception:
        vmem_bytes = None
    if vmem_bytes is not None and vmem_bytes > 96 * 1024 * 1024:
        # v5e / v6e class (128 MiB physical VMEM): larger blocks, raised scoped limit.
        return 40 * 1024 * 1024, 64 * 1024 * 1024
    # v7x class (64 MiB per TensorCore) or unknown: stay conservative.
    return 20 * 1024 * 1024, 48 * 1024 * 1024


def _choose_bags_per_block(B, N, C, H, itemsize, budget_bytes):
    """Pick TB (bags per grid step).

    Constraints / preferences:
      * TB divides B and is sublane-legal for the (TB, C) out block (TB % 8 == 0 or TB == B).
      * Padded ((8,128) tiles), double-buffered footprint of x + out blocks + weights fits
        the generation-aware budget.
      * Prefer >= 2 grid steps (ideally an even count) so both v7x TensorCores get work,
        then maximize TB to amortize the ~0.35 us per-step overhead with big DMAs.
    """
    lanes = _round_up(C, 128)
    subl = _round_up(N, 8)
    w_bytes = (_round_up(C, 8) * _round_up(H, 128) + 8 * _round_up(H, 128)) * 4

    def footprint(tb):
        x_blk = tb * subl * lanes * itemsize
        o_blk = _round_up(tb, 8) * lanes * itemsize
        return 2 * (x_blk + o_blk) + 2 * w_bytes          # x2 for double buffering

    divs = [d for d in range(1, B + 1) if B % d == 0 and (d % 8 == 0 or d == B)]
    fitting = [d for d in divs if footprint(d) <= budget_bytes]
    if not fitting:
        # Even the smallest legal block overflows the budget; fall back and rely on the
        # vmem_limit headroom.
        # TODO(synk): add an N-streaming grid axis with online-softmax accumulators for
        # bags whose single (N, C) footprint alone overflows VMEM.
        return min(divs)
    best = [d for d in fitting if B // d >= 2 and (B // d) % 2 == 0]
    if not best:
        best = [d for d in fitting if B // d >= 2]
    if not best:
        best = fitting
    return max(best)


def instance_attention(x, w1, w2):
    """x: (B, N, C); w1: (H, C) [PyTorch Linear layout]; w2: (1, H). Returns (B, C)."""
    B, N, C = x.shape
    H = w1.shape[0]
    itemsize = jnp.dtype(x.dtype).itemsize

    # One-time tiny weight transpose outside the kernel so the in-kernel dot is a plain
    # (TB*N, C) @ (C, H) rank-2 matmul.
    w1t = jnp.swapaxes(w1, 0, 1)                          # (C, H)

    block_budget, vmem_limit = _vmem_budgets()
    tb = _choose_bags_per_block(B, N, C, H, itemsize, block_budget)
    grid = (B // tb,)

    # Advisory cost model: this custom call is memory-dominated.
    flops = 2 * B * N * C * H + 2 * B * N * H + 2 * B * N * C + 6 * B * N
    transcendentals = B * N * (H + 1)
    bytes_accessed = itemsize * (B * N * C + B * C) + 4 * (H * C + H)

    return pl.pallas_call(
        instance_attention_kernel,
        out_shape=jax.ShapeDtypeStruct((B, C), x.dtype),
        grid_spec=pltpu.PrefetchScalarGridSpec(
            num_scalar_prefetch=0,
            grid=grid,
            in_specs=[
                pl.BlockSpec((tb, N, C), lambda b: (b, 0, 0)),
                pl.BlockSpec((C, H), lambda b: (0, 0)),
                pl.BlockSpec((1, H), lambda b: (0, 0)),
            ],
            out_specs=pl.BlockSpec((tb, C), lambda b: (b, 0)),
        ),
        compiler_params=pltpu.CompilerParams(
            dimension_semantics=("parallel",),
            vmem_limit_bytes=vmem_limit,
        ),
        cost_estimate=pl.CostEstimate(
            flops=flops,
            transcendentals=transcendentals,
            bytes_accessed=bytes_accessed,
        ),
    )(x, w1t, w2)


def instance_attention_ref(x, w1, w2):
    # Pure-JAX reference matching the PyTorch module (high-precision matmuls).
    att = jnp.tanh(jnp.einsum("bnc,hc->bnh", x, w1, precision="highest"))
    att = jnp.einsum("bnh,oh->bno", att, w2, precision="highest")      # (B, N, 1)
    att = jax.nn.softmax(att, axis=1)
    out = jnp.einsum("bno,bnc->boc", att, x, precision="highest")      # (B, 1, C)
    return out[:, 0, :]


if __name__ == "__main__":
    # Small shapes consistent with the module: B=2 bags, N=8 instances, C=32 channels.
    B, N, C = 2, 8, 32
    reduction = 16
    H = C // reduction  # hidden = 2

    key = jax.random.PRNGKey(0)
    kx, k1, k2 = jax.random.split(key, 3)

    x = jax.random.normal(kx, (B, N, C), dtype=jnp.float32)
    # Deterministic synthetic parameters (PyTorch Linear weight layout: (out, in)).
    w1 = jax.random.normal(k1, (H, C), dtype=jnp.float32) * 0.1
    w2 = jax.random.normal(k2, (1, H), dtype=jnp.float32) * 0.1

    out = jax.block_until_ready(instance_attention(x, w1, w2))
    ref = instance_attention_ref(x, w1, w2)

    assert out.shape == (B, C)
    # Loose tolerance covers possible reduced-precision f32 MXU passes on some generations;
    # any structural bug (wrong softmax axis, wrong contraction) would show O(0.1-1) errors.
    assert jnp.allclose(out, ref, atol=1e-2, rtol=1e-2), "mismatch vs reference"

    print("KERNEL_OK")
</pallas_src>

<mosaic_0001>
module attributes {stable_mosaic.version = 11 : i64} {
  func.func @instance_attention_kernel(%arg0: i32, %arg1: memref<2x8x32xf32, #tpu.memory_space<vmem>>, %arg2: memref<32x2xf32, #tpu.memory_space<vmem>>, %arg3: memref<1x2xf32, #tpu.memory_space<vmem>>, %arg4: memref<2x32xf32, #tpu.memory_space<vmem>>) attributes {dimension_semantics = [#tpu.dimension_semantics<parallel>], iteration_bounds = array<i64: 1>, scalar_prefetch = 0 : i64, scratch_operands = 0 : i64, tpu.core_type = #tpu.core_type<tc>, window_params = [{transform_indices = @transform_0, window_bounds = array<i64: 2, 8, 32>}, {pipeline_mode = #tpu.pipeline_mode<synchronous>, transform_indices = @transform_1, window_bounds = array<i64: 32, 2>}, {pipeline_mode = #tpu.pipeline_mode<synchronous>, transform_indices = @transform_2, window_bounds = array<i64: 1, 2>}, {transform_indices = @transform_3, window_bounds = array<i64: 2, 32>}]} {
    %c0 = arith.constant 0 : index
    %c0_0 = arith.constant 0 : index
    %c0_1 = arith.constant 0 : index
    %0 = vector.load %arg1[%c0, %c0_0, %c0_1] : memref<2x8x32xf32, #tpu.memory_space<vmem>>, vector<2x8x32xf32>
    %c0_2 = arith.constant 0 : index
    %c0_3 = arith.constant 0 : index
    %1 = vector.load %arg2[%c0_2, %c0_3] : memref<32x2xf32, #tpu.memory_space<vmem>>, vector<32x2xf32>
    %c0_4 = arith.constant 0 : index
    %c0_5 = arith.constant 0 : index
    %2 = vector.load %arg3[%c0_4, %c0_5] : memref<1x2xf32, #tpu.memory_space<vmem>>, vector<1x2xf32>
    %3 = vector.shape_cast %0 : vector<2x8x32xf32> to vector<16x32xf32>
    %cst = arith.constant dense<0.000000e+00> : vector<16x2xf32>
    %4 = tpu.matmul %3, %1, %cst {dimension_numbers = #tpu.dot_dimension_numbers<[1], [0], [0], [1], [0, 0, 1, 1], [], []>} : vector<16x32xf32>, vector<32x2xf32>, vector<16x2xf32> -> vector<16x2xf32>
    %5 = math.tanh %4 : vector<16x2xf32>
    %6 = vector.shape_cast %5 : vector<16x2xf32> to vector<2x8x2xf32>
    %7 = vector.shape_cast %2 : vector<1x2xf32> to vector<1x1x2xf32>
    %8 = vector.shape_cast %7 : vector<1x1x2xf32> to vector<1x1x2xf32>
    %9 = vector.broadcast %8 : vector<1x1x2xf32> to vector<2x1x2xf32>
    "tpu.trace_start"() <{level = 10 : i32, message = "bqh,bnh->bqn"}> : () -> ()
    %cst_6 = arith.constant dense<0.000000e+00> : vector<2x1x8xf32>
    %10 = tpu.matmul %9, %6, %cst_6 {dimension_numbers = #tpu.dot_dimension_numbers<[2], [2], [1], [1], [0, 0, 0, 1, 1, 1], [0], [0]>} : vector<2x1x2xf32>, vector<2x8x2xf32>, vector<2x1x8xf32> -> vector<2x1x8xf32>
    "tpu.trace_stop"() : () -> ()
    %cst_7 = arith.constant dense<0xFF800000> : vector<2x1xf32>
    %11 = vector.multi_reduction <maximumf>, %10, %cst_7 [2] : vector<2x1x8xf32> to vector<2x1xf32>
    %12 = vector.shape_cast %11 : vector<2x1xf32> to vector<2x1x1xf32>
    %13 = vector.broadcast %12 : vector<2x1x1xf32> to vector<2x1x8xf32>
    %14 = arith.subf %10, %13 : vector<2x1x8xf32>
    %15 = math.exp %14 : vector<2x1x8xf32>
    %cst_8 = arith.constant dense<0.000000e+00> : vector<2x1xf32>
    %16 = vector.multi_reduction <add>, %15, %cst_8 [2] : vector<2x1x8xf32> to vector<2x1xf32>
    %17 = vector.shape_cast %16 : vector<2x1xf32> to vector<2x1x1xf32>
    %18 = tpu.reciprocal %17 {approx = true} : vector<2x1x1xf32> -> vector<2x1x1xf32>
    %19 = arith.mulf %17, %18 : vector<2x1x1xf32>
    %cst_9 = arith.constant 2.000000e+00 : f32
    %20 = vector.broadcast %cst_9 : f32 to vector<2x1x1xf32>
    %21 = arith.subf %20, %19 : vector<2x1x1xf32>
    %22 = arith.mulf %18, %21 : vector<2x1x1xf32>
    %23 = vector.broadcast %22 : vector<2x1x1xf32> to vector<2x1x8xf32>
    %24 = arith.mulf %15, %23 : vector<2x1x8xf32>
    "tpu.trace_start"() <{level = 10 : i32, message = "bqn,bnc->bqc"}> : () -> ()
    %cst_10 = arith.constant dense<0.000000e+00> : vector<2x1x32xf32>
    %25 = tpu.matmul %24, %0, %cst_10 {dimension_numbers = #tpu.dot_dimension_numbers<[2], [1], [1], [2], [0, 0, 0, 1, 1, 2], [0], [0]>} : vector<2x1x8xf32>, vector<2x8x32xf32>, vector<2x1x32xf32> -> vector<2x1x32xf32>
    "tpu.trace_stop"() : () -> ()
    %26 = vector.shape_cast %25 : vector<2x1x32xf32> to vector<2x32xf32>
    %c0_11 = arith.constant 0 : index
    %c0_12 = arith.constant 0 : index
    %27 = vector.load %arg4[%c0_11, %c0_12] : memref<2x32xf32, #tpu.memory_space<vmem>>, vector<2x32xf32>
    tpu.vector_store %arg4[%c0_11, %c0_12], %26 {strides = array<i32>} : memref<2x32xf32, #tpu.memory_space<vmem>>, vector<2x32xf32>,
    return
  }
  func.func @transform_0(%arg0: i32) -> (i32, i32, i32) {
    %c0_i32 = arith.constant 0 : i32
    %c0_i32_0 = arith.constant 0 : i32
    %c0_i32_1 = arith.constant 0 : i32
    return %arg0, %c0_i32, %c0_i32_0 : i32, i32, i32
  }
  func.func @transform_1(%arg0: i32) -> (i32, i32) {
    %c0_i32 = arith.constant 0 : i32
    %c0_i32_0 = arith.constant 0 : i32
    %c0_i32_1 = arith.constant 0 : i32
    return %c0_i32, %c0_i32_0 : i32, i32
  }
  func.func @transform_2(%arg0: i32) -> (i32, i32) {
    %c0_i32 = arith.constant 0 : i32
    %c0_i32_0 = arith.constant 0 : i32
    %c0_i32_1 = arith.constant 0 : i32
    return %c0_i32, %c0_i32_0 : i32, i32
  }
  func.func @transform_3(%arg0: i32) -> (i32, i32) {
    %c0_i32 = arith.constant 0 : i32
    %c0_i32_0 = arith.constant 0 : i32
    return %arg0, %c0_i32 : i32, i32
  }
}

</mosaic_0001>

<bundles_post_ra>
// kernel: tpu_custom_call.1
= control target key start
LH: loop header
LB: loop body
LE: loop exit
PB: predicated region body
PF: predicated region fallthrough
CT: control target
= control target key end

     0   :  { %vm22_vm0 = vcmask 261120   ;;  %s618_s0 = inlined_call_operand.vmem [shape: f32[2,8,32], index: 0, kind: input, shape index: {}]   ;;  %s619_s1 = inlined_call_operand.vmem [shape: f32[32,2], index: 1, kind: input, shape index: {}]   ;;  %s620_s2 = inlined_call_operand.vmem [shape: f32[1,2], index: 2, kind: input, shape index: {}]   ;;  %s621_s3 = inlined_call_operand.hbm [shape: f32[2,32], index: 3, kind: output, shape index: {}]  }
   0x1   :  { %v17_v0 = vld [vmem:[%s619_s1] sm:$0xff]  ;;  %v18_v1 = vld [vmem:[%s619_s1 + $0x8] sm:$0xff]  ;;  %v19_v2 = vld [vmem:[%s619_s1 + $0x10] sm:$0xff] }
   0x2   :  { %v507_v3 = vpack.c.bf16 %v18_v1, %v17_v0  ;;  %v20_v4 = vld [vmem:[%s619_s1 + $0x18] sm:$0xff]  ;;  %v15_v5 = vld [vmem:[%s618_s0] sm:$0xff] }
   0x3   :  { %v511_v6 = vpack.c.bf16 %v20_v4, %v19_v2  ;;  %484 = vmatprep.mubr.msk.f32.mxu0 %vm22_vm0, %v15_v5 }
   0x4   :  { %8 = vsyncpa [#allocation3], 0  ;;  %508 = vmatprep.subr.bf16.mxu0 %v507_v3  ;;  %v16_v7 = vld [vmem:[%s618_s0 + $0x8] sm:$0xff]  ;;  %v554_v8 = vmov 0.0   ;;  %vm555_vm1 = vmmov 0   ;;  %vm106_vm2 = vcmask 15360  }
   0x5   :  { %510 = vmatpush3.bf16.msra.mxu0 %v507_v3  ;;  %487 = vmatprep.subr.mxu1 %v554_v8  ;;  %v21_v12 = vld [vmem:[%s620_s2] sm:$0x1]  ;;  %vm256_vm3 = vcmask 57344   ;;  %vm285_vm4 = vcmask 64512   ;;  %s556_s0 = smov [#allocation2]   ;;  %vm435_vm5 = vcmask 1041409  }
   0x6   :  { %512 = vmatprep.subr.bf16.mxu0 %v511_v6  ;;  %489 = vmatprep.mubr.msk.f32.mxu1 %vm555_vm1, %v554_v8  ;;  %s446_s2 = sshll.u32 %s556_s0, 4  ;;  %vm438_vm6 = vcmask 254976   ;;  %s447_s2 = int_to_ptr.vmem [resolvable:$true] %s446_s2 }
   0x7   :  { %s530_s25 = scalar_lea.vmem %s447_s2, 32  ;;  %p535_p1 = scmp.lt.s32.totalorder %s447_s2, %s447_s2 }
   0x8   :  { %p531_p0 = scmp.ne.s32.totalorder %s447_s2, %s530_s25  ;;  %p536_p2 = scmp.lt.s32.totalorder %s530_s25, %s530_s25 }
   0x9   :  { %514 = vmatpush3.bf16.msra.mxu0 %v511_v6 }
   0xa   :  { %497 = vmatprep.subr.mxu0 %v554_v8  ;;  %p537_p3 = por %p536_p2, %p535_p1 }
   0xc   :  { %485 = vmatmul.mubr.msk.f32.vlgmr.msra.gmra.mrb[0].mxu0 %vm22_vm0, %v16_v7  ;;  %p538_p4 = pnand %p537_p3, %p531_p0 }
   0xd   :  { %498 = vmatpush3.msra.mxu0 %v15_v5  ;;  %499 = vmatprep.mubr.msk.f32.mxu0 %vm555_vm1, %v554_v8 }
  0xdf   :  { %v486_v9 = vpop.f32.mrb[0].mxu0 }
  0xe0   :  { %v95_v10 = vpop.f32.mrb[1].mxu0 }
  0xe1   :  { %518 = vtanh.f32 %v95_v10 }
  0xe2   :  { %520 = vtanh.f32 %v486_v9 }
  0xeb   :  { %v519_v11 = vpop.eup %518 }
  0xec   :  { %488 = vmatpush3.xpose.msk.msra.mxu1 %vm106_vm2, %v519_v11  ;;  %v521_v13 = vpop.eup %520 }
  0xed   :  { %492 = vmatprep.subr.mxu1 %v554_v8 }
  0xef   :  { %490 = vmatmul.mubr.msk.f32.vlgmr.msra.gmra.mrb[0].mxu1 %vm106_vm2, %v21_v12 }
  0xf0   :  { %493 = vmatpush3.xpose.msk.msra.mxu1 %vm106_vm2, %v521_v13  ;;  %494 = vmatprep.mubr.msk.f32.mxu1 %vm555_vm1, %v554_v8 }
  0xf1   :  { %502 = vmatprep.subr.mxu1 %v554_v8 }
  0xf3   :  { %495 = vmatmul.mubr.msk.f32.vlgmr.msra.gmra.mrb[2].mxu1 %vm106_vm2, %v21_v12 }
  0xf4   :  { %503 = vmatpush3.msra.mxu1 %v16_v7  ;;  %504 = vmatprep.mubr.msk.f32.mxu1 %vm555_vm1, %v554_v8 }
 0x1c2   :  { %v179_v14 = vpop.f32.mrb[0].mxu1 }
 0x1c3   :  { %v491_v15 = vpop.f32.mrb[1].mxu1  ;;  %v257_v19 = vsel %vm256_vm3, %v179_v14, -inf }
 0x1c6   :  { %v252_v16 = vpop.f32.mrb[2].mxu1 }
 0x1c7   :  { %v496_v17 = vpop.f32.mrb[3].mxu1  ;;  %v260_v18 = vsel %vm256_vm3, %v252_v16, -inf }
 0x1c8   :  { %261 = vmax.xlane.f32.xlu0 %v260_v18 }
 0x1cc   :  { %258 = vmax.xlane.f32.xlu0 %v257_v19 }
 0x255   :  { %v262_v20 = vpop.xlane.xlu0 %261 }
 0x256   :  { %v264_v21 = vsub.f32 %v252_v16, %v262_v20 }
 0x258   :  { %v267_v22 = vmul.f32 1.442695, %v264_v21 }
 0x259   :  { %v259_v23 = vpop.xlane.xlu0 %258 }
 0x25a   :  { %522 = vpow2.f32 %v267_v22  ;;  %v263_v24 = vsub.f32 %v179_v14, %v259_v23 }
 0x25c   :  { %v265_v25 = vmul.f32 1.442695, %v263_v24 }
 0x25e   :  { %524 = vpow2.f32 %v265_v25 }
 0x264   :  { %v523_v26 = vpop.eup %522 }
 0x265   :  { %v272_v27 = vsel %vm256_vm3, %v523_v26, 0.0 }
 0x266   :  { %273 = vadd.xlane.f32.xlu1 %v272_v27 }
 0x268   :  { %v525_v28 = vpop.eup %524 }
 0x269   :  { %v269_v29 = vsel %vm256_vm3, %v525_v28, 0.0 }
 0x26a   :  { %270 = vadd.xlane.f32.xlu1 %v269_v29 }
 0x2f3   :  { %v274_v30 = vpop.xlane.xlu1 %273 }
 0x2f4   :  { %526 = vrcp.f32 %v274_v30 }
 0x2f7   :  { %v271_v31 = vpop.xlane.xlu1 %270 }
 0x2f8   :  { %528 = vrcp.f32 %v271_v31 }
 0x2fe   :  { %v527_v32 = vpop.eup %526 }
 0x2ff   :  { %v278_v33 = vmul.f32 %v527_v32, %v274_v30 }
 0x301   :  { %v280_v34 = vsub.f32 2.0, %v278_v33 }
 0x302   :  { %v529_v35 = vpop.eup %528 }
 0x303   :  { %v282_v36 = vmul.f32 %v527_v32, %v280_v34  ;;  %v277_v37 = vmul.f32 %v529_v35, %v271_v31 }
 0x305   :  { %v284_v38 = vmul.f32 %v523_v26, %v282_v36  ;;  %v279_v39 = vsub.f32 2.0, %v277_v37 }
 0x307   :  { %v281_v40 = vmul.f32 %v529_v35, %v279_v39  ;;  %505 = vmatmul.mubr.msk.f32.vlgmr.msra.gmra.mrb[4].mxu1 %vm285_vm4, %v284_v38 }
 0x309   :  { %v283_v41 = vmul.f32 %v525_v28, %v281_v40 }
 0x30b   :  { %500 = vmatmul.mubr.msk.f32.vlgmr.msra.gmra.mrb[2].mxu0 %vm285_vm4, %v283_v41 }
 0x3da   :  { %v428_v42 = vpop.f32.mrb[4].mxu1 }
 0x3db   :  { %v506_v43 = vpop.f32.mrb[5].mxu1  ;;  %v434_v44 = vrot.slane %v428_v42, 7 }
 0x3de   :  { %v355_v45 = vpop.f32.mrb[2].mxu0 }
 0x3df   :  { %v436_v46 = vsel %vm435_vm5, %v434_v44, %v355_v45  ;;  %v501_v47 = vpop.f32.mrb[3].mxu0 }
 0x3e0   :  { %439 = vst.msk [vmem:[#allocation2] sm:$0x3] %vm438_vm6, %v436_v46 }
 0x3e1   :  { %541 = shalt.err (!%p538_p4)
}
 0x3e2   :  { %s542_s28 = scalar_lea.hbm %s621_s3, 32 }
 0x3e3   :  { %p543_p5 = scmp.ne.s32.totalorder %s621_s3, %s542_s28  ;;  %p546_p6 = scmp.lt.u32.totalorder %s542_s28, %s621_s3 }
 0x3e5   :  { %p548_p7 = pnand %p546_p6, %p543_p5 }
 0x3e7   :  { %551 = shalt.err (!%p548_p7)
}
 0x3e8   :  { %449 = dma.vmem_to_hbm [thread:$0]  %s447_s2, 32, %s621_s3, [#allocation3]  }
 0x3e9   :  { %552 = dma.done.wait [#allocation3], 32  }
 0x3ea   :  { %553 = vsyncadd [#allocation3], 4294967264 }
 0x3eb   :  { %453 = vsyncpa [#allocation3], 1 }

</bundles_post_ra>
